<compile_context>
chip_gen: v7x
topology: tpu7x:2x2x1
jax: 0.10.0
libtpu: 0.0.40
codegen_flags: <defaults>
</compile_context>

<pallas_src>
import jax
import jax.numpy as jnp
from jax.experimental import pallas as pl
from jax.experimental.pallas import tpu as pltpu


def _round_up(v, m):
    return ((v + m - 1) // m) * m


def _round_down(v, m):
    return (v // m) * m


def _vmem_capacity_bytes():
    """Physical per-core VMEM; conservative 64 MiB fallback (v7x-sized)."""
    try:
        info = pltpu.get_tpu_info()
        for name in ("vmem_capacity_bytes", "vmem_bytes", "vmem_size_bytes"):
            v = getattr(info, name, None)
            if v:
                return int(v)
    except Exception:
        pass
    return 64 * 1024 * 1024


def _mlp_kernel(x_ref,
                w1_ref, b1_ref,
                w2_ref, b2_ref,
                w3_ref, b3_ref,
                w4_ref, b4_ref,
                o_ref):
    """One batch tile of the 4-layer MLP: bf16 MXU matmuls, f32 accumulation,
    f32 bias + sigmoid (tanh form, single EUP push per element)."""
    mm = w1_ref.dtype  # bf16 (or f32 if the caller disabled the cast)

    def sigmoid(h):
        # sigmoid(x) = 0.5 * (tanh(0.5 * x) + 1)  -> one EUP op instead of two.
        return 0.5 * (jnp.tanh(0.5 * h) + 1.0)

    x = x_ref[...].astype(mm)

    h = jnp.dot(x, w1_ref[...], preferred_element_type=jnp.float32)
    h = sigmoid(h + b1_ref[...])

    h = jnp.dot(h.astype(mm), w2_ref[...], preferred_element_type=jnp.float32)
    h = sigmoid(h + b2_ref[...])

    h = jnp.dot(h.astype(mm), w3_ref[...], preferred_element_type=jnp.float32)
    h = sigmoid(h + b3_ref[...])

    out = jnp.dot(h.astype(mm), w4_ref[...], preferred_element_type=jnp.float32)
    o_ref[...] = (out + b4_ref[...]).astype(o_ref.dtype)


def mlp_forward(x, params, *, max_block_batch=8192, matmul_dtype=jnp.bfloat16):
    """x: (B, input_dim) float32. params: list of (W, b), W (in, out), b (1, out)."""
    (w1, b1), (w2, b2), (w3, b3), (w4, b4) = params
    B, in_dim = x.shape
    hid = w1.shape[1]
    out_dim = w4.shape[1]

    # Cast weights once to the MXU-native matmul dtype.
    w1c, w2c, w3c, w4c = (w.astype(matmul_dtype) for w in (w1, w2, w3, w4))

    # Resident weight/bias bytes, counted double-buffered (default pipelining).
    fixed_bytes = 2 * (sum(int(w.size) * w.dtype.itemsize for w in (w1c, w2c, w3c, w4c))
                       + sum(int(b.size) * 4 for b in (b1, b2, b3, b4)))

    # Per-row VMEM: double-buffered f32 x/out tiles + live f32/bf16 intermediates.
    per_row = (2 * 4 * (in_dim + out_dim)          # pipelined x / out tiles
               + (4 + 2) * in_dim                  # x f32 + bf16 copy
               + 3 * (4 + 2) * hid                 # hidden activations f32 + bf16
               + 4 * out_dim)                      # final f32 result

    vmem_cap = _vmem_capacity_bytes()
    budget = int(vmem_cap * 0.70)                  # ~44 MiB v7x, ~90 MiB v5e/v6e

    # Minimal padding only when B is not sublane-aligned (avoids a full x copy
    # in the common case).
    b_pad = _round_up(B, 8)
    x_in = x if b_pad == B else jnp.zeros((b_pad, in_dim), x.dtype).at[:B, :].set(x)

    # Grow the batch tile to fill the VMEM budget (multiple of 128), then cap.
    rows_fit = max((budget - fixed_bytes) // per_row, 128)
    tb = max(128, _round_down(rows_fit, 128))
    tb = min(tb, max_block_batch)
    if b_pad >= 256:
        # Keep at least 2 grid steps so both v7x TensorCores get work.
        tb = min(tb, _round_up(pl.cdiv(b_pad, 2), 128))
    tb = min(tb, b_pad)                            # block must not exceed array
    tb = max(8, _round_down(tb, 8))

    grid = (pl.cdiv(b_pad, tb),)                   # last tile may be partial:
    # OOB input rows are undefined but independent; OOB output rows are dropped.

    x_spec = pl.BlockSpec((tb, in_dim), lambda i: (i, 0))
    out_spec = pl.BlockSpec((tb, out_dim), lambda i: (i, 0))
    const = lambda a: pl.BlockSpec(a.shape, lambda i: (0, 0))

    vmem_limit = int(min(max(tb * per_row + fixed_bytes + (8 << 20), 16 << 20),
                         int(vmem_cap * 0.75)))

    out = pl.pallas_call(
        _mlp_kernel,
        out_shape=jax.ShapeDtypeStruct((b_pad, out_dim), x.dtype),
        grid=grid,
        in_specs=[x_spec,
                  const(w1c), const(b1),
                  const(w2c), const(b2),
                  const(w3c), const(b3),
                  const(w4c), const(b4)],
        out_specs=out_spec,
        compiler_params=pltpu.CompilerParams(
            dimension_semantics=("parallel",),
            vmem_limit_bytes=vmem_limit),
    )(x_in, w1c, b1, w2c, b2, w3c, b3, w4c, b4)

    return out[:B, :] if b_pad != B else out


def init_mlp_params(key, input_dim, hidden_dim, output_dim):
    """nn.Linear default init: U(-1/sqrt(fan_in), 1/sqrt(fan_in))."""
    dims = [(input_dim, hidden_dim),
            (hidden_dim, hidden_dim),
            (hidden_dim, hidden_dim),
            (hidden_dim, output_dim)]
    params = []
    for (fan_in, fan_out) in dims:
        key, kw, kb = jax.random.split(key, 3)
        bound = 1.0 / jnp.sqrt(fan_in)
        W = jax.random.uniform(kw, (fan_in, fan_out), jnp.float32, -bound, bound)
        b = jax.random.uniform(kb, (1, fan_out), jnp.float32, -bound, bound)
        params.append((W, b))
    return params


def mlp_reference_f32(x, params):
    h = x
    for i, (W, b) in enumerate(params):
        h = h @ W + b
        if i < len(params) - 1:
            h = jax.nn.sigmoid(h)
    return h


def mlp_reference_mixed(x, params, matmul_dtype=jnp.bfloat16):
    """Same mixed-precision recipe as the kernel (bf16 matmul, f32 accumulate)."""
    h = x
    for i, (W, b) in enumerate(params):
        h = jnp.dot(h.astype(matmul_dtype), W.astype(matmul_dtype),
                    preferred_element_type=jnp.float32) + b
        if i < len(params) - 1:
            h = jax.nn.sigmoid(h)
    return h


if __name__ == "__main__":
    key = jax.random.PRNGKey(0)
    batch, input_dim, hidden_dim, output_dim = 8, 16, 32, 4

    key, kx = jax.random.split(key)
    x = jax.random.normal(kx, (batch, input_dim), jnp.float32)
    params = init_mlp_params(key, input_dim, hidden_dim, output_dim)

    out = mlp_forward(x, params)
    out = jax.block_until_ready(out)
    assert out.shape == (batch, output_dim)

    ref_mixed = mlp_reference_mixed(x, params)
    ref_f32 = mlp_reference_f32(x, params)
    assert jnp.allclose(out, ref_mixed, atol=2e-3, rtol=2e-3), \
        "Pallas output mismatch vs mixed-precision reference"
    assert jnp.allclose(out, ref_f32, atol=5e-2, rtol=5e-2), \
        "Pallas output mismatch vs f32 reference"

    print("KERNEL_OK")
</pallas_src>

<mosaic_0001>
module attributes {stable_mosaic.version = 11 : i64} {
  func.func @_mlp_kernel(%arg0: i32, %arg1: memref<8x16xf32, #tpu.memory_space<vmem>>, %arg2: memref<16x32xbf16, #tpu.memory_space<vmem>>, %arg3: memref<1x32xf32, #tpu.memory_space<vmem>>, %arg4: memref<32x32xbf16, #tpu.memory_space<vmem>>, %arg5: memref<1x32xf32, #tpu.memory_space<vmem>>, %arg6: memref<32x32xbf16, #tpu.memory_space<vmem>>, %arg7: memref<1x32xf32, #tpu.memory_space<vmem>>, %arg8: memref<32x4xbf16, #tpu.memory_space<vmem>>, %arg9: memref<1x4xf32, #tpu.memory_space<vmem>>, %arg10: memref<8x4xf32, #tpu.memory_space<vmem>>) attributes {dimension_semantics = [#tpu.dimension_semantics<parallel>], iteration_bounds = array<i64: 1>, scalar_prefetch = 0 : i64, scratch_operands = 0 : i64, tpu.core_type = #tpu.core_type<tc>, window_params = [{transform_indices = @transform_0, window_bounds = array<i64: 8, 16>}, {pipeline_mode = #tpu.pipeline_mode<synchronous>, transform_indices = @transform_1, window_bounds = array<i64: 16, 32>}, {pipeline_mode = #tpu.pipeline_mode<synchronous>, transform_indices = @transform_2, window_bounds = array<i64: 1, 32>}, {pipeline_mode = #tpu.pipeline_mode<synchronous>, transform_indices = @transform_3, window_bounds = array<i64: 32, 32>}, {pipeline_mode = #tpu.pipeline_mode<synchronous>, transform_indices = @transform_4, window_bounds = array<i64: 1, 32>}, {pipeline_mode = #tpu.pipeline_mode<synchronous>, transform_indices = @transform_5, window_bounds = array<i64: 32, 32>}, {pipeline_mode = #tpu.pipeline_mode<synchronous>, transform_indices = @transform_6, window_bounds = array<i64: 1, 32>}, {pipeline_mode = #tpu.pipeline_mode<synchronous>, transform_indices = @transform_7, window_bounds = array<i64: 32, 4>}, {pipeline_mode = #tpu.pipeline_mode<synchronous>, transform_indices = @transform_8, window_bounds = array<i64: 1, 4>}, {transform_indices = @transform_9, window_bounds = array<i64: 8, 4>}]} {
    %c0 = arith.constant 0 : index
    %c0_0 = arith.constant 0 : index
    %0 = vector.load %arg1[%c0, %c0_0] : memref<8x16xf32, #tpu.memory_space<vmem>>, vector<8x16xf32>
    %1 = arith.truncf %0 : vector<8x16xf32> to vector<8x16xbf16>
    %c0_1 = arith.constant 0 : index
    %c0_2 = arith.constant 0 : index
    %2 = vector.load %arg2[%c0_1, %c0_2] : memref<16x32xbf16, #tpu.memory_space<vmem>>, vector<16x32xbf16>
    %cst = arith.constant dense<0.000000e+00> : vector<8x32xf32>
    %3 = tpu.matmul %1, %2, %cst {dimension_numbers = #tpu.dot_dimension_numbers<[1], [0], [0], [1], [0, 0, 1, 1], [], []>} : vector<8x16xbf16>, vector<16x32xbf16>, vector<8x32xf32> -> vector<8x32xf32>
    %c0_3 = arith.constant 0 : index
    %c0_4 = arith.constant 0 : index
    %4 = vector.load %arg3[%c0_3, %c0_4] : memref<1x32xf32, #tpu.memory_space<vmem>>, vector<1x32xf32>
    %5 = vector.broadcast %4 : vector<1x32xf32> to vector<8x32xf32>
    %6 = arith.addf %3, %5 : vector<8x32xf32>
    %cst_5 = arith.constant 5.000000e-01 : f32
    %7 = vector.broadcast %cst_5 : f32 to vector<8x32xf32>
    %8 = arith.mulf %7, %6 : vector<8x32xf32>
    %9 = math.tanh %8 : vector<8x32xf32>
    %cst_6 = arith.constant 1.000000e+00 : f32
    %10 = vector.broadcast %cst_6 : f32 to vector<8x32xf32>
    %11 = arith.addf %9, %10 : vector<8x32xf32>
    %cst_7 = arith.constant 5.000000e-01 : f32
    %12 = vector.broadcast %cst_7 : f32 to vector<8x32xf32>
    %13 = arith.mulf %12, %11 : vector<8x32xf32>
    %14 = arith.truncf %13 : vector<8x32xf32> to vector<8x32xbf16>
    %c0_8 = arith.constant 0 : index
    %c0_9 = arith.constant 0 : index
    %15 = vector.load %arg4[%c0_8, %c0_9] : memref<32x32xbf16, #tpu.memory_space<vmem>>, vector<32x32xbf16>
    %cst_10 = arith.constant dense<0.000000e+00> : vector<8x32xf32>
    %16 = tpu.matmul %14, %15, %cst_10 {dimension_numbers = #tpu.dot_dimension_numbers<[1], [0], [0], [1], [0, 0, 1, 1], [], []>} : vector<8x32xbf16>, vector<32x32xbf16>, vector<8x32xf32> -> vector<8x32xf32>
    %c0_11 = arith.constant 0 : index
    %c0_12 = arith.constant 0 : index
    %17 = vector.load %arg5[%c0_11, %c0_12] : memref<1x32xf32, #tpu.memory_space<vmem>>, vector<1x32xf32>
    %18 = vector.broadcast %17 : vector<1x32xf32> to vector<8x32xf32>
    %19 = arith.addf %16, %18 : vector<8x32xf32>
    %cst_13 = arith.constant 5.000000e-01 : f32
    %20 = vector.broadcast %cst_13 : f32 to vector<8x32xf32>
    %21 = arith.mulf %20, %19 : vector<8x32xf32>
    %22 = math.tanh %21 : vector<8x32xf32>
    %cst_14 = arith.constant 1.000000e+00 : f32
    %23 = vector.broadcast %cst_14 : f32 to vector<8x32xf32>
    %24 = arith.addf %22, %23 : vector<8x32xf32>
    %cst_15 = arith.constant 5.000000e-01 : f32
    %25 = vector.broadcast %cst_15 : f32 to vector<8x32xf32>
    %26 = arith.mulf %25, %24 : vector<8x32xf32>
    %27 = arith.truncf %26 : vector<8x32xf32> to vector<8x32xbf16>
    %c0_16 = arith.constant 0 : index
    %c0_17 = arith.constant 0 : index
    %28 = vector.load %arg6[%c0_16, %c0_17] : memref<32x32xbf16, #tpu.memory_space<vmem>>, vector<32x32xbf16>
    %cst_18 = arith.constant dense<0.000000e+00> : vector<8x32xf32>
    %29 = tpu.matmul %27, %28, %cst_18 {dimension_numbers = #tpu.dot_dimension_numbers<[1], [0], [0], [1], [0, 0, 1, 1], [], []>} : vector<8x32xbf16>, vector<32x32xbf16>, vector<8x32xf32> -> vector<8x32xf32>
    %c0_19 = arith.constant 0 : index
    %c0_20 = arith.constant 0 : index
    %30 = vector.load %arg7[%c0_19, %c0_20] : memref<1x32xf32, #tpu.memory_space<vmem>>, vector<1x32xf32>
    %31 = vector.broadcast %30 : vector<1x32xf32> to vector<8x32xf32>
    %32 = arith.addf %29, %31 : vector<8x32xf32>
    %cst_21 = arith.constant 5.000000e-01 : f32
    %33 = vector.broadcast %cst_21 : f32 to vector<8x32xf32>
    %34 = arith.mulf %33, %32 : vector<8x32xf32>
    %35 = math.tanh %34 : vector<8x32xf32>
    %cst_22 = arith.constant 1.000000e+00 : f32
    %36 = vector.broadcast %cst_22 : f32 to vector<8x32xf32>
    %37 = arith.addf %35, %36 : vector<8x32xf32>
    %cst_23 = arith.constant 5.000000e-01 : f32
    %38 = vector.broadcast %cst_23 : f32 to vector<8x32xf32>
    %39 = arith.mulf %38, %37 : vector<8x32xf32>
    %40 = arith.truncf %39 : vector<8x32xf32> to vector<8x32xbf16>
    %c0_24 = arith.constant 0 : index
    %c0_25 = arith.constant 0 : index
    %41 = vector.load %arg8[%c0_24, %c0_25] : memref<32x4xbf16, #tpu.memory_space<vmem>>, vector<32x4xbf16>
    %cst_26 = arith.constant dense<0.000000e+00> : vector<8x4xf32>
    %42 = tpu.matmul %40, %41, %cst_26 {dimension_numbers = #tpu.dot_dimension_numbers<[1], [0], [0], [1], [0, 0, 1, 1], [], []>} : vector<8x32xbf16>, vector<32x4xbf16>, vector<8x4xf32> -> vector<8x4xf32>
    %c0_27 = arith.constant 0 : index
    %c0_28 = arith.constant 0 : index
    %43 = vector.load %arg9[%c0_27, %c0_28] : memref<1x4xf32, #tpu.memory_space<vmem>>, vector<1x4xf32>
    %44 = vector.broadcast %43 : vector<1x4xf32> to vector<8x4xf32>
    %45 = arith.addf %42, %44 : vector<8x4xf32>
    %c0_29 = arith.constant 0 : index
    %c0_30 = arith.constant 0 : index
    %46 = vector.load %arg10[%c0_29, %c0_30] : memref<8x4xf32, #tpu.memory_space<vmem>>, vector<8x4xf32>
    tpu.vector_store %arg10[%c0_29, %c0_30], %45 {strides = array<i32>} : memref<8x4xf32, #tpu.memory_space<vmem>>, vector<8x4xf32>,
    return
  }
  func.func @transform_0(%arg0: i32) -> (i32, i32) {
    %c0_i32 = arith.constant 0 : i32
    %c0_i32_0 = arith.constant 0 : i32
    return %arg0, %c0_i32 : i32, i32
  }
  func.func @transform_1(%arg0: i32) -> (i32, i32) {
    %c0_i32 = arith.constant 0 : i32
    %c0_i32_0 = arith.constant 0 : i32
    %c0_i32_1 = arith.constant 0 : i32
    return %c0_i32, %c0_i32_0 : i32, i32
  }
  func.func @transform_2(%arg0: i32) -> (i32, i32) {
    %c0_i32 = arith.constant 0 : i32
    %c0_i32_0 = arith.constant 0 : i32
    %c0_i32_1 = arith.constant 0 : i32
    return %c0_i32, %c0_i32_0 : i32, i32
  }
  func.func @transform_3(%arg0: i32) -> (i32, i32) {
    %c0_i32 = arith.constant 0 : i32
    %c0_i32_0 = arith.constant 0 : i32
    %c0_i32_1 = arith.constant 0 : i32
    return %c0_i32, %c0_i32_0 : i32, i32
  }
  func.func @transform_4(%arg0: i32) -> (i32, i32) {
    %c0_i32 = arith.constant 0 : i32
    %c0_i32_0 = arith.constant 0 : i32
    %c0_i32_1 = arith.constant 0 : i32
    return %c0_i32, %c0_i32_0 : i32, i32
  }
  func.func @transform_5(%arg0: i32) -> (i32, i32) {
    %c0_i32 = arith.constant 0 : i32
    %c0_i32_0 = arith.constant 0 : i32
    %c0_i32_1 = arith.constant 0 : i32
    return %c0_i32, %c0_i32_0 : i32, i32
  }
  func.func @transform_6(%arg0: i32) -> (i32, i32) {
    %c0_i32 = arith.constant 0 : i32
    %c0_i32_0 = arith.constant 0 : i32
    %c0_i32_1 = arith.constant 0 : i32
    return %c0_i32, %c0_i32_0 : i32, i32
  }
  func.func @transform_7(%arg0: i32) -> (i32, i32) {
    %c0_i32 = arith.constant 0 : i32
    %c0_i32_0 = arith.constant 0 : i32
    %c0_i32_1 = arith.constant 0 : i32
    return %c0_i32, %c0_i32_0 : i32, i32
  }
  func.func @transform_8(%arg0: i32) -> (i32, i32) {
    %c0_i32 = arith.constant 0 : i32
    %c0_i32_0 = arith.constant 0 : i32
    %c0_i32_1 = arith.constant 0 : i32
    return %c0_i32, %c0_i32_0 : i32, i32
  }
  func.func @transform_9(%arg0: i32) -> (i32, i32) {
    %c0_i32 = arith.constant 0 : i32
    %c0_i32_0 = arith.constant 0 : i32
    return %arg0, %c0_i32 : i32, i32
  }
}

</mosaic_0001>

<bundles_post_ra>
// kernel: tpu_custom_call.1
= control target key start
LH: loop header
LB: loop body
LE: loop exit
PB: predicated region body
PF: predicated region fallthrough
CT: control target
= control target key end

     0   :  { %14 = vsyncpa [#allocation3], 0  ;;  %s629_s0 = inlined_call_operand.hbm [shape: f32[8,16], index: 0, kind: input, shape index: {}]   ;;  %s630_s1 = inlined_call_operand.hbm [shape: bf16[16,32], index: 1, kind: input, shape index: {}]   ;;  %s631_s2 = inlined_call_operand.vmem [shape: f32[1,32], index: 2, kind: input, shape index: {}]   ;;  %s632_s3 = inlined_call_operand.vmem [shape: bf16[32,32], index: 3, kind: input, shape index: {}]   ;;  %s633_s4 = inlined_call_operand.hbm [shape: f32[1,32], index: 4, kind: input, shape index: {}]   ;;  %s634_s5 = inlined_call_operand.vmem [shape: bf16[32,32], index: 5, kind: input, shape index: {}]   ;;  %s635_s6 = inlined_call_operand.vmem [shape: f32[1,32], index: 6, kind: input, shape index: {}]   ;;  %s636_s7 = inlined_call_operand.vmem [shape: bf16[32,4], index: 7, kind: input, shape index: {}]   ;;  %s637_s8 = inlined_call_operand.vmem [shape: f32[1,4], index: 8, kind: input, shape index: {}]   ;;  %s638_s9 = inlined_call_operand.vmem [shape: f32[8,4], index: 9, kind: output, shape index: {}]  }
   0x1   :  { %15 = vsyncpa [#allocation5], 0  ;;  %s499_s30 = smov [#allocation4]   ;;  %s429_s13 = scalar_lea.hbm %s630_s1, 128 }
   0x2   :  { %s31_s10 = sshll.u32 %s499_s30, 4  ;;  %p430_p0 = scmp.ne.s32.totalorder %s630_s1, %s429_s13  ;;  %s32_s10 = int_to_ptr.vmem [resolvable:$true] %s31_s10 }
   0x3   :  { %p433_p1 = scmp.lt.u32.totalorder %s429_s13, %s630_s1 }
   0x5   :  { %p435_p2 = pnand %p433_p1, %p430_p0 }
   0x7   :  { %438 = shalt.err (!%p435_p2)
}
   0x8   :  { %s439_s18 = scalar_lea.vmem %s32_s10, 128  ;;  %p444_p4 = scmp.lt.s32.totalorder %s32_s10, %s32_s10 }
   0x9   :  { %p440_p3 = scmp.ne.s32.totalorder %s32_s10, %s439_s18  ;;  %p445_p5 = scmp.lt.s32.totalorder %s439_s18, %s439_s18 }
   0xb   :  { %p446_p6 = por %p445_p5, %p444_p4 }
   0xd   :  { %p447_p7 = pnand %p446_p6, %p440_p3 }
   0xf   :  { %450 = shalt.err (!%p447_p7)
}
  0x10   :  { %s500_s19 = smov 64   ;;  %s501_s20 = smov 4  }
  0x11   :  { %37 = dma.hbm_to_vmem [thread:$0]  %s630_s1, 128, %s32_s10, [#allocation5], %s500_s19, %s500_s19, %s501_s20  }
  0x12   :  { %s502_s23 = smov [#allocation2]   ;;  %s503_s25 = smov [#allocation6]  }
  0x13   :  { %s22_s24 = sshll.u32 %s502_s23, 4  ;;  %s48_s26 = sshll.u32 %s503_s25, 4  ;;  %s23_s24 = int_to_ptr.vmem [resolvable:$true] %s22_s24  ;;  %s49_s26 = int_to_ptr.vmem [resolvable:$true] %s48_s26 }
  0x14   :  { %s451_s29 = scalar_lea.hbm %s629_s0, 128 }
  0x15   :  { %p452_p8 = scmp.ne.s32.totalorder %s629_s0, %s451_s29  ;;  %p455_p9 = scmp.lt.u32.totalorder %s451_s29, %s629_s0 }
  0x17   :  { %p457_p10 = pnand %p455_p9, %p452_p8 }
  0x19   :  { %460 = shalt.err (!%p457_p10)
}
  0x1a   :  { %s461_s1 = scalar_lea.vmem %s23_s24, 128  ;;  %p466_p12 = scmp.lt.s32.totalorder %s23_s24, %s23_s24 }
  0x1b   :  { %p462_p11 = scmp.ne.s32.totalorder %s23_s24, %s461_s1  ;;  %p467_p13 = scmp.lt.s32.totalorder %s461_s1, %s461_s1 }
  0x1d   :  { %p468_p0 = por %p467_p13, %p466_p12 }
  0x1f   :  { %p469_p1 = pnand %p468_p0, %p462_p11 }
  0x21   :  { %472 = shalt.err (!%p469_p1)
}
  0x22   :  { %25 = dma.hbm_to_vmem [thread:$0]  %s629_s0, 128, %s23_s24, [#allocation3]  }
  0x23   :  { %s473_s17 = scalar_lea.hbm %s633_s4, 16 }
  0x24   :  { %p474_p2 = scmp.ne.s32.totalorder %s633_s4, %s473_s17  ;;  %p477_p3 = scmp.lt.u32.totalorder %s473_s17, %s633_s4 }
  0x26   :  { %p479_p4 = pnand %p477_p3, %p474_p2 }
  0x28   :  { %482 = shalt.err (!%p479_p4)
}
  0x29   :  { %s483_s22 = scalar_lea.vmem %s49_s26, 16  ;;  %s487_s23 = scalar_lea.vmem %s49_s26, 32 }
  0x2a   :  { %p484_p5 = scmp.ne.s32.totalorder %s49_s26, %s483_s22  ;;  %p488_p6 = scmp.lt.s32.totalorder %s49_s26, %s49_s26 }
  0x2b   :  { %p489_p7 = scmp.lt.s32.totalorder %s487_s23, %s483_s22 }
  0x2d   :  { %p490_p8 = por %p489_p7, %p488_p6 }
  0x2f   :  { %p491_p9 = pnand %p490_p8, %p484_p5 }
  0x31   :  { %494 = shalt.err (!%p491_p9)
}
  0x32   :  { %51 = dma.hbm_to_vmem [thread:$0]  %s633_s4, 16, %s49_s26, [#allocation5]  }
  0x33   :  { %495 = dma.done.wait [#allocation3], 128  }
  0x34   :  { %496 = vsyncadd [#allocation3], 4294967168 }
  0x35   :  { %497 = dma.done.wait [#allocation5], 144  }
  0x36   :  { %498 = vsyncadd [#allocation5], 4294967152  ;;  %v504_v0 = vmov 0.0   ;;  %vm505_vm0 = vmmov 0   ;;  %v416_v1 = vld [vmem:[#allocation4] sm:$0xff]   ;;  %v70_v2 = vld [vmem:[#allocation2] sm:$0xff] }
  0x37   :  { %379 = vmatprep.subr.bf16.mxu0 %v504_v0  ;;  %381 = vmatprep.mubr.msk.bf16.mxu0 %vm505_vm0, %v504_v0  ;;  %vm87_vm1 = vcmask 130048   ;;  %v71_v3 = vpack.c.bf16 %v70_v2, %v70_v2  ;;  %v417_v4 = vld [vmem:[%s632_s3] sm:$0xff]   ;;  %v418_v5 = vld [vmem:[%s632_s3 + $0x8] sm:$0xff]   ;;  %vm159_vm2 = vcmask 261120   ;;  %v356_v19 = vld [vmem:[#allocation6] ss:$0 sm:$0xff] }
  0x38   :  { %385 = vmatprep.subr.bf16.mxu1 %v504_v0  ;;  %389 = vmatprep.mubr.msk.bf16.mxu1 %vm505_vm0, %v504_v0  ;;  %v353_v6 = vld [vmem:[%s631_s2] ss:$0 sm:$0xff]  ;;  %v420_v18 = vld [vmem:[%s634_s5 + $0x8] sm:$0xff]   ;;  %vm345_vm3 = vcmask 31744  }
  0x39   :  { %380 = vmatpush3.bf16.msra.mxu0 %v416_v1  ;;  %386 = vmatpush3.bf16.msra.mxu1 %v417_v4  ;;  %v419_v17 = vld [vmem:[%s634_s5] sm:$0xff]   ;;  %v422_v31 = vld [vmem:[%s636_s7 + $0x8] sm:$0xff]  }
  0x3a   :  { %393 = vmatprep.subr.bf16.mxu0 %v504_v0  ;;  %387 = vmatprep.subr.bf16.mxu1 %v504_v0  ;;  %v421_v30 = vld [vmem:[%s636_s7] sm:$0xff]  }
  0x3b   :  { %v360_v32 = vld [vmem:[%s635_s6] ss:$0 sm:$0xff] }
  0x3c   :  { %382 = vmatmul.mubr.msk.bf16.vlgmr.msra.gmra.mrb[0].mxu0 %vm87_vm1, %v71_v3  ;;  %v364_v43 = vld [vmem:[%s637_s8] ss:$0 sm:$0xff] }
  0x3d   :  { %397 = vmatprep.mubr.msk.bf16.mxu0 %vm505_vm0, %v504_v0  ;;  %388 = vmatpush3.bf16.msra.mxu1 %v418_v5 }
  0x3e   :  { %401 = vmatprep.subr.bf16.mxu1 %v504_v0  ;;  %394 = vmatpush3.bf16.msra.mxu0 %v419_v17 }
  0x3f   :  { %395 = vmatprep.subr.bf16.mxu0 %v504_v0 }
  0x42   :  { %396 = vmatpush3.bf16.msra.mxu0 %v420_v18 }
 0x10f   :  { %v125_v7 = vpop.f32.mrb[0].mxu0 }
 0x110   :  { %v126_v8 = vadd.f32 %v353_v6, %v125_v7  ;;  %v383_v9 = vpop.f32.mrb[1].mxu0 }
 0x111   :  { %v128_v10 = vpop.f32.mrb[2].mxu0 }
 0x112   :  { %v131_v11 = vmul.f32 0.5, %v126_v8  ;;  %v384_v12 = vpop.f32.mrb[3].mxu0 }
 0x114   :  { %423 = vtanh.f32 %v131_v11 }
 0x11e   :  { %v424_v13 = vpop.eup %423 }
 0x11f   :  { %v133_v14 = vadd.f32 1.0, %v424_v13 }
 0x121   :  { %v134_v15 = vmul.f32 0.5, %v133_v14 }
 0x123   :  { %v135_v16 = vpack.c.bf16 %v134_v15, %v134_v15 }
 0x125   :  { %390 = vmatmul.mubr.msk.bf16.vlgmr.msra.gmra.mrb[0].mxu1 %vm159_vm2, %v135_v16 }
 0x126   :  { %405 = vmatprep.mubr.msk.bf16.mxu1 %vm505_vm0, %v504_v0  ;;  %402 = vmatpush3.bf16.msra.mxu1 %v421_v30 }
 0x127   :  { %403 = vmatprep.subr.bf16.mxu1 %v504_v0 }
 0x12a   :  { %404 = vmatpush3.bf16.msra.mxu1 %v422_v31 }
 0x1f8   :  { %v197_v20 = vpop.f32.mrb[0].mxu1 }
 0x1f9   :  { %v198_v21 = vadd.f32 %v356_v19, %v197_v20  ;;  %v391_v22 = vpop.f32.mrb[1].mxu1 }
 0x1fa   :  { %v200_v23 = vpop.f32.mrb[2].mxu1 }
 0x1fb   :  { %v203_v24 = vmul.f32 0.5, %v198_v21  ;;  %v392_v25 = vpop.f32.mrb[3].mxu1 }
 0x1fd   :  { %425 = vtanh.f32 %v203_v24 }
 0x207   :  { %v426_v26 = vpop.eup %425 }
 0x208   :  { %v205_v27 = vadd.f32 1.0, %v426_v26 }
 0x20a   :  { %v206_v28 = vmul.f32 0.5, %v205_v27 }
 0x20c   :  { %v207_v29 = vpack.c.bf16 %v206_v28, %v206_v28 }
 0x20e   :  { %398 = vmatmul.mubr.msk.bf16.vlgmr.msra.gmra.mrb[4].mxu0 %vm159_vm2, %v207_v29 }
 0x2e1   :  { %v268_v33 = vpop.f32.mrb[4].mxu0 }
 0x2e2   :  { %v269_v34 = vadd.f32 %v360_v32, %v268_v33  ;;  %v399_v35 = vpop.f32.mrb[5].mxu0 }
 0x2e3   :  { %v271_v36 = vpop.f32.mrb[6].mxu0 }
 0x2e4   :  { %v274_v37 = vmul.f32 0.5, %v269_v34  ;;  %v400_v38 = vpop.f32.mrb[7].mxu0 }
 0x2e6   :  { %427 = vtanh.f32 %v274_v37 }
 0x2f0   :  { %v428_v39 = vpop.eup %427 }
 0x2f1   :  { %v276_v40 = vadd.f32 1.0, %v428_v39 }
 0x2f3   :  { %v277_v41 = vmul.f32 0.5, %v276_v40 }
 0x2f5   :  { %v278_v42 = vpack.c.bf16 %v277_v41, %v277_v41 }
 0x2f7   :  { %406 = vmatmul.mubr.msk.bf16.vlgmr.msra.gmra.mrb[4].mxu1 %vm159_vm2, %v278_v42 }
 0x3ca   :  { %v339_v44 = vpop.f32.mrb[4].mxu1 }
 0x3cb   :  { %v340_v45 = vadd.f32 %v364_v43, %v339_v44  ;;  %v407_v46 = vpop.f32.mrb[5].mxu1 }
 0x3cc   :  { %v342_v47 = vpop.f32.mrb[6].mxu1 }
 0x3cd   :  { %346 = vst.msk [vmem:[%s638_s9] sm:$0xff] %vm345_vm3, %v340_v45  ;;  %v408_v48 = vpop.f32.mrb[7].mxu1 }
 0x3ce   :  { %351 = vsyncpa [#allocation3], 1 }
 0x3cf   :  { %352 = vsyncpa [#allocation5], 1 }

</bundles_post_ra>
